<compile_context>
chip_gen: v7x
topology: tpu7x:2x2x1
jax: 0.10.0
libtpu: 0.0.40
codegen_flags: <defaults>
</compile_context>

<pallas_src>
import functools

import jax
import jax.numpy as jnp
from jax.experimental import pallas as pl
from jax.experimental.pallas import tpu as pltpu

LANE = 128  # batch tiles are multiples of the 128-wide lane axis


def _round_up(n, m):
    return ((n + m - 1) // m) * m


def mlp_kernel(x_ref, w1_ref, b1_ref, w2_ref, b2_ref, w3_ref, b3_ref, o_ref,
               *, compute_dtype):
    # Transposed layout: features on sublanes, batch on lanes.
    #   x_ref : (16, TILE_B)
    #   wN_ref: (out, in)   bN_ref: (out, 1)
    #   o_ref : (3, TILE_B)
    x = x_ref[...].astype(compute_dtype)

    # fc1 + ReLU  (K=16 is MXU-underfilled but the weight is tiny; accepted)
    h1 = jnp.dot(w1_ref[...].astype(compute_dtype), x,
                 preferred_element_type=jnp.float32)            # (64, TILE_B)
    h1 = jnp.maximum(h1 + b1_ref[...], 0.0)

    # fc2 + ReLU
    h2 = jnp.dot(w2_ref[...].astype(compute_dtype), h1.astype(compute_dtype),
                 preferred_element_type=jnp.float32)            # (64, TILE_B)
    h2 = jnp.maximum(h2 + b2_ref[...], 0.0)

    # fc3 (no activation)
    out = jnp.dot(w3_ref[...].astype(compute_dtype), h2.astype(compute_dtype),
                  preferred_element_type=jnp.float32)           # (3, TILE_B)
    out = out + b3_ref[...]

    o_ref[...] = out.astype(o_ref.dtype)


def net_forward(x, params, *, tile_b=512, compute_dtype=jnp.float32):
    """x: (B, 16) f32.  params: PyTorch-layout (w: (out, in), b: (out,))."""
    w1, b1, w2, b2, w3, b3 = params
    B, F = x.shape
    assert F == 16 and w1.shape == (64, 16) and w3.shape == (3, 64)

    # Batch tiling: lane-aligned tile, pad batch up to a whole number of tiles.
    tile_b = max(LANE, (tile_b // LANE) * LANE)
    pad_b = _round_up(B, LANE)
    tile_b = min(tile_b, pad_b)
    pad_b = _round_up(pad_b, tile_b)
    grid = (pad_b // tile_b,)

    # Transpose + pad in the JAX wrapper (not inside the kernel).
    xt = jnp.pad(x.T, ((0, 0), (0, pad_b - B)))                 # (16, pad_b)
    b1c = b1.reshape(-1, 1).astype(jnp.float32)                 # (64, 1)
    b2c = b2.reshape(-1, 1).astype(jnp.float32)                 # (64, 1)
    b3c = b3.reshape(-1, 1).astype(jnp.float32)                 # (3, 1)

    resident = lambda shape: pl.BlockSpec(shape, lambda i: (0, 0))

    out_t = pl.pallas_call(
        functools.partial(mlp_kernel, compute_dtype=compute_dtype),
        out_shape=jax.ShapeDtypeStruct((3, pad_b), jnp.float32),
        grid=grid,
        in_specs=[
            pl.BlockSpec((16, tile_b), lambda i: (0, i)),       # x: streamed
            resident(w1.shape), resident(b1c.shape),            # weights/biases:
            resident(w2.shape), resident(b2c.shape),            # VMEM-resident
            resident(w3.shape), resident(b3c.shape),
        ],
        out_specs=pl.BlockSpec((3, tile_b), lambda i: (0, i)),  # lane-dense out
        compiler_params=pltpu.CompilerParams(
            dimension_semantics=("parallel",)),                 # v7x 2-TC split
    )(xt, w1, b1c, w2, b2c, w3, b3c)

    return out_t[:, :B].T                                       # (B, 3)


def init_params(key):
    # Deterministic synthetic init mirroring PyTorch nn.Linear shapes (out, in).
    k1, k2, k3, k4, k5, k6 = jax.random.split(key, 6)
    w1 = jax.random.normal(k1, (64, 16), jnp.float32) * 0.1
    b1 = jax.random.normal(k2, (64,), jnp.float32) * 0.1
    w2 = jax.random.normal(k3, (64, 64), jnp.float32) * 0.1
    b2 = jax.random.normal(k4, (64,), jnp.float32) * 0.1
    w3 = jax.random.normal(k5, (3, 64), jnp.float32) * 0.1
    b3 = jax.random.normal(k6, (3,), jnp.float32) * 0.1
    return (w1, b1, w2, b2, w3, b3)


def net_ref(x, params):
    # Pure-JAX reference (matches PyTorch semantics: x @ W.T + b).
    w1, b1, w2, b2, w3, b3 = params
    h1 = jnp.maximum(x @ w1.T + b1, 0.0)
    h2 = jnp.maximum(h1 @ w2.T + b2, 0.0)
    return h2 @ w3.T + b3


if __name__ == "__main__":
    key = jax.random.PRNGKey(0)
    kx, kx2, kp = jax.random.split(key, 3)
    params = init_params(kp)

    # Small batch (single grid step), exact f32 path.
    x_small = jax.random.normal(kx, (8, 16), jnp.float32)
    out = jax.block_until_ready(net_forward(x_small, params))
    ref = net_ref(x_small, params)
    assert out.shape == (8, 3), out.shape
    assert jnp.allclose(out, ref, atol=1e-5, rtol=1e-5), "f32 small-batch mismatch"

    # Larger batch: exercises multiple grid steps + padded partial tile.
    x_big = jax.random.normal(kx2, (300, 16), jnp.float32)
    out_big = jax.block_until_ready(net_forward(x_big, params, tile_b=128))
    ref_big = net_ref(x_big, params)
    assert out_big.shape == (300, 3), out_big.shape
    assert jnp.allclose(out_big, ref_big, atol=1e-5, rtol=1e-5), "f32 tiled mismatch"

    # bf16 MXU-operand fast path (v6e/v7x recommendation); f32 accumulation,
    # so only ~1e-2-level deviation is expected vs the f32 reference.
    out_bf16 = jax.block_until_ready(
        net_forward(x_big, params, tile_b=128, compute_dtype=jnp.bfloat16))
    assert jnp.allclose(out_bf16, ref_big, atol=5e-2, rtol=5e-2), "bf16 mismatch"

    print("KERNEL_OK")
</pallas_src>

<mosaic_0001>
module attributes {stable_mosaic.version = 11 : i64} {
  func.func @mlp_kernel(%arg0: i32, %arg1: memref<16x128xf32, #tpu.memory_space<vmem>>, %arg2: memref<64x16xf32, #tpu.memory_space<vmem>>, %arg3: memref<64x1xf32, #tpu.memory_space<vmem>>, %arg4: memref<64x64xf32, #tpu.memory_space<vmem>>, %arg5: memref<64x1xf32, #tpu.memory_space<vmem>>, %arg6: memref<3x64xf32, #tpu.memory_space<vmem>>, %arg7: memref<3x1xf32, #tpu.memory_space<vmem>>, %arg8: memref<3x128xf32, #tpu.memory_space<vmem>>) attributes {dimension_semantics = [#tpu.dimension_semantics<parallel>], iteration_bounds = array<i64: 1>, scalar_prefetch = 0 : i64, scratch_operands = 0 : i64, tpu.core_type = #tpu.core_type<tc>, window_params = [{transform_indices = @transform_0, window_bounds = array<i64: 16, 128>}, {pipeline_mode = #tpu.pipeline_mode<synchronous>, transform_indices = @transform_1, window_bounds = array<i64: 64, 16>}, {pipeline_mode = #tpu.pipeline_mode<synchronous>, transform_indices = @transform_2, window_bounds = array<i64: 64, 1>}, {pipeline_mode = #tpu.pipeline_mode<synchronous>, transform_indices = @transform_3, window_bounds = array<i64: 64, 64>}, {pipeline_mode = #tpu.pipeline_mode<synchronous>, transform_indices = @transform_4, window_bounds = array<i64: 64, 1>}, {pipeline_mode = #tpu.pipeline_mode<synchronous>, transform_indices = @transform_5, window_bounds = array<i64: 3, 64>}, {pipeline_mode = #tpu.pipeline_mode<synchronous>, transform_indices = @transform_6, window_bounds = array<i64: 3, 1>}, {transform_indices = @transform_7, window_bounds = array<i64: 3, 128>}]} {
    %c0 = arith.constant 0 : index
    %c0_0 = arith.constant 0 : index
    %0 = vector.load %arg1[%c0, %c0_0] : memref<16x128xf32, #tpu.memory_space<vmem>>, vector<16x128xf32>
    %c0_1 = arith.constant 0 : index
    %c0_2 = arith.constant 0 : index
    %1 = vector.load %arg2[%c0_1, %c0_2] : memref<64x16xf32, #tpu.memory_space<vmem>>, vector<64x16xf32>
    %cst = arith.constant dense<0.000000e+00> : vector<64x128xf32>
    %2 = tpu.matmul %1, %0, %cst {dimension_numbers = #tpu.dot_dimension_numbers<[1], [0], [0], [1], [0, 0, 1, 1], [], []>} : vector<64x16xf32>, vector<16x128xf32>, vector<64x128xf32> -> vector<64x128xf32>
    %c0_3 = arith.constant 0 : index
    %c0_4 = arith.constant 0 : index
    %3 = vector.load %arg3[%c0_3, %c0_4] : memref<64x1xf32, #tpu.memory_space<vmem>>, vector<64x1xf32>
    %4 = vector.broadcast %3 : vector<64x1xf32> to vector<64x128xf32>
    %5 = arith.addf %2, %4 : vector<64x128xf32>
    %cst_5 = arith.constant 0.000000e+00 : f32
    %6 = vector.broadcast %cst_5 : f32 to vector<64x128xf32>
    %7 = arith.maximumf %5, %6 : vector<64x128xf32>
    %c0_6 = arith.constant 0 : index
    %c0_7 = arith.constant 0 : index
    %8 = vector.load %arg4[%c0_6, %c0_7] : memref<64x64xf32, #tpu.memory_space<vmem>>, vector<64x64xf32>
    %cst_8 = arith.constant dense<0.000000e+00> : vector<64x128xf32>
    %9 = tpu.matmul %8, %7, %cst_8 {dimension_numbers = #tpu.dot_dimension_numbers<[1], [0], [0], [1], [0, 0, 1, 1], [], []>} : vector<64x64xf32>, vector<64x128xf32>, vector<64x128xf32> -> vector<64x128xf32>
    %c0_9 = arith.constant 0 : index
    %c0_10 = arith.constant 0 : index
    %10 = vector.load %arg5[%c0_9, %c0_10] : memref<64x1xf32, #tpu.memory_space<vmem>>, vector<64x1xf32>
    %11 = vector.broadcast %10 : vector<64x1xf32> to vector<64x128xf32>
    %12 = arith.addf %9, %11 : vector<64x128xf32>
    %cst_11 = arith.constant 0.000000e+00 : f32
    %13 = vector.broadcast %cst_11 : f32 to vector<64x128xf32>
    %14 = arith.maximumf %12, %13 : vector<64x128xf32>
    %c0_12 = arith.constant 0 : index
    %c0_13 = arith.constant 0 : index
    %15 = vector.load %arg6[%c0_12, %c0_13] : memref<3x64xf32, #tpu.memory_space<vmem>>, vector<3x64xf32>
    %cst_14 = arith.constant dense<0.000000e+00> : vector<3x128xf32>
    %16 = tpu.matmul %15, %14, %cst_14 {dimension_numbers = #tpu.dot_dimension_numbers<[1], [0], [0], [1], [0, 0, 1, 1], [], []>} : vector<3x64xf32>, vector<64x128xf32>, vector<3x128xf32> -> vector<3x128xf32>
    %c0_15 = arith.constant 0 : index
    %c0_16 = arith.constant 0 : index
    %17 = vector.load %arg7[%c0_15, %c0_16] : memref<3x1xf32, #tpu.memory_space<vmem>>, vector<3x1xf32>
    %18 = vector.broadcast %17 : vector<3x1xf32> to vector<3x128xf32>
    %19 = arith.addf %16, %18 : vector<3x128xf32>
    %c0_17 = arith.constant 0 : index
    %c0_18 = arith.constant 0 : index
    %20 = vector.load %arg8[%c0_17, %c0_18] : memref<3x128xf32, #tpu.memory_space<vmem>>, vector<3x128xf32>
    tpu.vector_store %arg8[%c0_17, %c0_18], %19 {strides = array<i32>} : memref<3x128xf32, #tpu.memory_space<vmem>>, vector<3x128xf32>,
    return
  }
  func.func @transform_0(%arg0: i32) -> (i32, i32) {
    %c0_i32 = arith.constant 0 : i32
    %c0_i32_0 = arith.constant 0 : i32
    return %c0_i32, %arg0 : i32, i32
  }
  func.func @transform_1(%arg0: i32) -> (i32, i32) {
    %c0_i32 = arith.constant 0 : i32
    %c0_i32_0 = arith.constant 0 : i32
    %c0_i32_1 = arith.constant 0 : i32
    return %c0_i32, %c0_i32_0 : i32, i32
  }
  func.func @transform_2(%arg0: i32) -> (i32, i32) {
    %c0_i32 = arith.constant 0 : i32
    %c0_i32_0 = arith.constant 0 : i32
    %c0_i32_1 = arith.constant 0 : i32
    return %c0_i32, %c0_i32_0 : i32, i32
  }
  func.func @transform_3(%arg0: i32) -> (i32, i32) {
    %c0_i32 = arith.constant 0 : i32
    %c0_i32_0 = arith.constant 0 : i32
    %c0_i32_1 = arith.constant 0 : i32
    return %c0_i32, %c0_i32_0 : i32, i32
  }
  func.func @transform_4(%arg0: i32) -> (i32, i32) {
    %c0_i32 = arith.constant 0 : i32
    %c0_i32_0 = arith.constant 0 : i32
    %c0_i32_1 = arith.constant 0 : i32
    return %c0_i32, %c0_i32_0 : i32, i32
  }
  func.func @transform_5(%arg0: i32) -> (i32, i32) {
    %c0_i32 = arith.constant 0 : i32
    %c0_i32_0 = arith.constant 0 : i32
    %c0_i32_1 = arith.constant 0 : i32
    return %c0_i32, %c0_i32_0 : i32, i32
  }
  func.func @transform_6(%arg0: i32) -> (i32, i32) {
    %c0_i32 = arith.constant 0 : i32
    %c0_i32_0 = arith.constant 0 : i32
    %c0_i32_1 = arith.constant 0 : i32
    return %c0_i32, %c0_i32_0 : i32, i32
  }
  func.func @transform_7(%arg0: i32) -> (i32, i32) {
    %c0_i32 = arith.constant 0 : i32
    %c0_i32_0 = arith.constant 0 : i32
    return %c0_i32, %arg0 : i32, i32
  }
}

</mosaic_0001>

<bundles_post_ra>
// kernel: tpu_custom_call.1
= control target key start
LH: loop header
LB: loop body
LE: loop exit
PB: predicated region body
PF: predicated region fallthrough
CT: control target
= control target key end

     0   :  { %vm85_vm0 = vcmask 130048   ;;  %v690_v4 = vmov 0   ;;  %s872_s0 = inlined_call_operand.vmem [shape: f32[16,128], index: 0, kind: input, shape index: {}]   ;;  %s873_s1 = inlined_call_operand.vmem [shape: f32[64,16], index: 1, kind: input, shape index: {}]   ;;  %s874_s2 = inlined_call_operand.vmem [shape: f32[64,1], index: 2, kind: input, shape index: {}]   ;;  %s875_s3 = inlined_call_operand.vmem [shape: f32[64,64], index: 3, kind: input, shape index: {}]   ;;  %s876_s4 = inlined_call_operand.vmem [shape: f32[64,1], index: 4, kind: input, shape index: {}]   ;;  %s877_s5 = inlined_call_operand.vmem [shape: f32[3,64], index: 5, kind: input, shape index: {}]   ;;  %s878_s6 = inlined_call_operand.vmem [shape: f32[3,1], index: 6, kind: input, shape index: {}]   ;;  %s879_s7 = inlined_call_operand.hbm [shape: f32[3,128], index: 7, kind: output, shape index: {}]  }
   0x1   :  { %v27_v0 = vld [vmem:[%s872_s0] sm:$0xff]  ;;  %v28_v1 = vld [vmem:[%s872_s0 + $0x8] sm:$0xff]  ;;  %664 = vset.pattern.permute.xlu0 %v690_v4  ;;  %665 = vset.pattern.permute.xlu1 %v690_v4  ;;  %v39_v7 = vld [vmem:[%s874_s2 + $0x10] sm:$0xff] }
   0x2   :  { %v29_v2 = vld [vmem:[%s873_s1] sm:$0xff]  ;;  %v627_v3 = vpack.c.bf16 %v28_v1, %v27_v0  ;;  %v30_v6 = vld [vmem:[%s873_s1 + $0x8] sm:$0xff]  ;;  %v31_v8 = vld [vmem:[%s873_s1 + $0x10] sm:$0xff]  ;;  %57 = vperm.xlu1 %665, %v39_v7  }
   0x3   :  { %568 = vmatprep.mubr.msk.f32.mxu0 %vm85_vm0, %v29_v2  ;;  %v37_v5 = vld [vmem:[%s874_s2] sm:$0xff]  ;;  %v38_v9 = vld [vmem:[%s874_s2 + $0x8] sm:$0xff]  ;;  %v40_v10 = vld [vmem:[%s874_s2 + $0x18] sm:$0xff] }
   0x4   :  { %628 = vmatprep.subr.bf16.mxu0 %v627_v3  ;;  %47 = vperm.xlu0 %664, %v37_v5   ;;  %v32_v11 = vld [vmem:[%s873_s1 + $0x18] sm:$0xff]  ;;  %v33_v12 = vld [vmem:[%s873_s1 + $0x20] sm:$0xff] }
   0x5   :  { %630 = vmatpush3.bf16.msra.mxu0 %v627_v3  ;;  %v41_v13 = vld [vmem:[%s874_s2 + $0x20] sm:$0xff] }
   0x6   :  { %62 = vperm.xlu1 %665, %v40_v10  }
   0x8   :  { %569 = vmatmul.mubr.msk.f32.vlgmr.msra.gmra.mrb[0].mxu0 %vm85_vm0, %v30_v6  ;;  %52 = vperm.xlu0 %664, %v38_v9  }
   0x9   :  { %571 = vmatprep.mubr.msk.f32.mxu0 %vm85_vm0, %v31_v8 }
   0xa   :  { %12 = vsyncpa [#allocation3], 0  ;;  %v42_v14 = vld [vmem:[%s874_s2 + $0x28] sm:$0xff]  ;;  %v35_v16 = vld [vmem:[%s873_s1 + $0x30] sm:$0xff]  ;;  %vm279_vm1 = vcmask 523264   ;;  %v691_v9 = vmov 0.0|0.0  }
   0xb   :  { %v34_v15 = vld [vmem:[%s873_s1 + $0x28] sm:$0xff]  ;;  %v43_v17 = vld [vmem:[%s874_s2 + $0x30] sm:$0xff]  ;;  %72 = vperm.xlu1 %665, %v42_v14   ;;  %v44_v18 = vld [vmem:[%s874_s2 + $0x38] sm:$0xff]  ;;  %647 = vmatprep.subr.bf16.mxu0 %v691_v9  ;;  %vm692_vm2 = vmmov 0   ;;  %v693_v10 = vmov 0.0  }
   0xc   :  { %572 = vmatmul.mubr.msk.f32.gmra.mrb[2].mxu0 %vm85_vm0, %v32_v11  ;;  %67 = vperm.xlu0 %664, %v41_v13   ;;  %v36_v19 = vld [vmem:[%s873_s1 + $0x38] sm:$0xff]  ;;  %v231_v20 = vld [vmem:[%s876_s4] sm:$0xff]  ;;  %v232_v21 = vld [vmem:[%s876_s4 + $0x8] sm:$0xff]  ;;  %s694_s1 = smov [#allocation2]  }
   0xd   :  { %574 = vmatprep.mubr.msk.f32.mxu0 %vm85_vm0, %v33_v12  ;;  %v233_v22 = vld [vmem:[%s876_s4 + $0x10] sm:$0xff]  ;;  %v234_v23 = vld [vmem:[%s876_s4 + $0x18] sm:$0xff]  ;;  %v235_v24 = vld [vmem:[%s876_s4 + $0x20] sm:$0xff]  ;;  %s504_s18 = sshll.u32 %s694_s1, 4  ;;  %s505_s18 = int_to_ptr.vmem [resolvable:$true] %s504_s18 }
   0xe   :  { %v236_v25 = vld [vmem:[%s876_s4 + $0x28] sm:$0xff]  ;;  %v237_v26 = vld [vmem:[%s876_s4 + $0x30] sm:$0xff]  ;;  %v238_v27 = vld [vmem:[%s876_s4 + $0x38] sm:$0xff]  ;;  %s666_s19 = scalar_lea.vmem %s505_s18, 64  ;;  %p671_p1 = scmp.lt.s32.totalorder %s505_s18, %s505_s18 }
   0xf   :  { %82 = vperm.xlu1 %665, %v44_v18   ;;  %v418_v28 = vld [vmem:[%s878_s6] sm:$0x7]  ;;  %v224_v2 = vld [vmem:[%s875_s3 + $0x8] sm:$0xff]  ;;  %v225_v3 = vld [vmem:[%s875_s3 + $0x10] sm:$0xff]  ;;  %p667_p0 = scmp.ne.s32.totalorder %s505_s18, %s666_s19  ;;  %p672_p2 = scmp.lt.s32.totalorder %s666_s19, %s666_s19 }
  0x10   :  { %575 = vmatmul.mubr.msk.f32.gmra.mrb[4].mxu0 %vm85_vm0, %v34_v15  ;;  %77 = vperm.xlu0 %664, %v43_v17   ;;  %v223_v29 = vld [vmem:[%s875_s3] sm:$0xff]  ;;  %v226_v4 = vld [vmem:[%s875_s3 + $0x18] sm:$0xff]  ;;  %v228_v6 = vld [vmem:[%s875_s3 + $0x28] sm:$0xff] }
  0x11   :  { %577 = vmatprep.mubr.msk.f32.mxu0 %vm85_vm0, %v35_v16  ;;  %596 = vmatprep.mubr.msk.f32.mxu1 %vm279_vm1, %v223_v29  ;;  %v227_v5 = vld [vmem:[%s875_s3 + $0x20] sm:$0xff]  ;;  %v229_v7 = vld [vmem:[%s875_s3 + $0x30] sm:$0xff]  ;;  %v230_v8 = vld [vmem:[%s875_s3 + $0x38] sm:$0xff]  ;;  %p673_p3 = por %p672_p2, %p671_p1 }
  0x13   :  { %246 = vperm.xlu1 %665, %v232_v21   ;;  %p674_p4 = pnand %p673_p3, %p667_p0 }
  0x14   :  { %578 = vmatmul.mubr.msk.f32.gmra.mrb[6].mxu0 %vm85_vm0, %v36_v19  ;;  %241 = vperm.xlu0 %664, %v231_v20  }
  0x15   :  { %624 = vmatprep.mubr.msk.f32.mxu0 %vm692_vm2, %v693_v10 }
  0x17   :  { %256 = vperm.xlu1 %665, %v234_v23  }
  0x18   :  { %251 = vperm.xlu0 %664, %v233_v22  }
  0x1b   :  { %266 = vperm.xlu1 %665, %v236_v25  }
  0x1c   :  { %261 = vperm.xlu0 %664, %v235_v24  }
  0x1f   :  { %276 = vperm.xlu1 %665, %v238_v27  }
  0x20   :  { %271 = vperm.xlu0 %664, %v237_v26  }
  0x24   :  { %421 = vperm.xlu0 %664, %v418_v28  }
  0x81   :  { %v58_v31 = vpop.permute.xlu1 %57 }
  0x83   :  { %v48_v30 = vpop.permute.xlu0 %47 }
  0x85   :  { %v63_v33 = vpop.permute.xlu1 %62 }
  0x87   :  { %v53_v32 = vpop.permute.xlu0 %52 }
  0x8a   :  { %v73_v43 = vpop.permute.xlu1 %72 }
  0x8b   :  { %v68_v46 = vpop.permute.xlu0 %67 }
  0x8e   :  { %v83_v55 = vpop.permute.xlu1 %82 }
  0x8f   :  { %v78_v58 = vpop.permute.xlu0 %77 }
  0x92   :  { %v247_v11 = vpop.permute.xlu1 %246 }
  0x93   :  { %v242_v12 = vpop.permute.xlu0 %241 }
  0x96   :  { %v257_v13 = vpop.permute.xlu1 %256 }
  0x97   :  { %v252_v15 = vpop.permute.xlu0 %251 }
  0x9a   :  { %v267_v24 = vpop.permute.xlu1 %266 }
  0x9b   :  { %v262_v27 = vpop.permute.xlu0 %261 }
  0xdb   :  { %v570_v34 = vpop.f32.mrb[0].mxu0 }
  0xdc   :  { %v182_v35 = vadd.f32 %v570_v34, %v53_v32  ;;  %v176_v36 = vpop.f32.mrb[1].mxu0 }
  0xdd   :  { %v177_v37 = vadd.f32 %v176_v36, %v48_v30  ;;  %v277_v36 = vpop.permute.xlu1 %276 }
  0xde   :  { %v216_v38 = vmax.f32 %v182_v35, 0.0 }
  0xdf   :  { %v215_v39 = vmax.f32 %v177_v37, 0.0  ;;  %v573_v40 = vpop.f32.mrb[2].mxu0 }
  0xe0   :  { %v192_v41 = vadd.f32 %v573_v40, %v63_v33  ;;  %v186_v42 = vpop.f32.mrb[3].mxu0 }
  0xe1   :  { %v187_v44 = vadd.f32 %v186_v42, %v58_v31  ;;  %v631_v45 = vpack.c.bf16 %v216_v38, %v215_v39  ;;  %v272_v39 = vpop.permute.xlu0 %271 }
  0xe2   :  { %v218_v47 = vmax.f32 %v192_v41, 0.0 }
  0xe3   :  { %v217_v48 = vmax.f32 %v187_v44, 0.0  ;;  %v576_v49 = vpop.f32.mrb[4].mxu0  ;;  %632 = vmatprep.subr.bf16.mxu1 %v631_v45 }
  0xe4   :  { %v202_v50 = vadd.f32 %v576_v49, %v73_v43  ;;  %v196_v51 = vpop.f32.mrb[5].mxu0  ;;  %634 = vmatpush3.bf16.msra.mxu1 %v631_v45 }
  0xe5   :  { %v635_v52 = vpack.c.bf16 %v218_v47, %v217_v48  ;;  %v197_v53 = vadd.f32 %v196_v51, %v68_v46  ;;  %v417_v47 = vld [vmem:[%s877_s5] sm:$0x7]  ;;  %v422_v48 = vpop.permute.xlu0 %421 }
  0xe6   :  { %v220_v54 = vmax.f32 %v202_v50, 0.0 }
  0xe7   :  { %v219_v56 = vmax.f32 %v197_v53, 0.0  ;;  %v579_v57 = vpop.f32.mrb[6].mxu0  ;;  %636 = vmatprep.subr.bf16.mxu1 %v635_v52 }
  0xe8   :  { %v212_v59 = vadd.f32 %v579_v57, %v83_v55  ;;  %v206_v60 = vpop.f32.mrb[7].mxu0  ;;  %638 = vmatpush3.bf16.msra.mxu1 %v635_v52 }
  0xe9   :  { %v639_v61 = vpack.c.bf16 %v220_v54, %v219_v56  ;;  %v207_v62 = vadd.f32 %v206_v60, %v78_v58 }
  0xea   :  { %v222_v63 = vmax.f32 %v212_v59, 0.0 }
  0xeb   :  { %v221_v0 = vmax.f32 %v207_v62, 0.0  ;;  %640 = vmatprep.subr.bf16.mxu1 %v639_v61 }
  0xec   :  { %642 = vmatpush3.bf16.msra.mxu1 %v639_v61 }
  0xed   :  { %v643_v1 = vpack.c.bf16 %v222_v63, %v221_v0 }
  0xef   :  { %644 = vmatprep.subr.bf16.mxu1 %v643_v1 }
  0xf0   :  { %646 = vmatpush3.bf16.msra.mxu1 %v643_v1 }
  0xf3   :  { %597 = vmatmul.mubr.msk.f32.vlgmr.msra.gmra.mrb[0].mxu1 %vm279_vm1, %v224_v2 }
  0xf4   :  { %599 = vmatprep.mubr.msk.f32.mxu1 %vm279_vm1, %v225_v3 }
  0xf7   :  { %600 = vmatmul.mubr.msk.f32.gmra.mrb[2].mxu1 %vm279_vm1, %v226_v4 }
  0xf8   :  { %602 = vmatprep.mubr.msk.f32.mxu1 %vm279_vm1, %v227_v5 }
  0xfb   :  { %603 = vmatmul.mubr.msk.f32.gmra.mrb[4].mxu1 %vm279_vm1, %v228_v6 }
  0xfc   :  { %605 = vmatprep.mubr.msk.f32.mxu1 %vm279_vm1, %v229_v7 }
  0xff   :  { %606 = vmatmul.mubr.msk.f32.gmra.mrb[6].mxu1 %vm279_vm1, %v230_v8 }
 0x1c6   :  { %v598_v14 = vpop.f32.mrb[0].mxu1 }
 0x1c7   :  { %v376_v16 = vadd.f32 %v598_v14, %v247_v11  ;;  %v370_v17 = vpop.f32.mrb[1].mxu1 }
 0x1c8   :  { %v371_v18 = vadd.f32 %v370_v17, %v242_v12 }
 0x1c9   :  { %v410_v19 = vmax.f32 %v376_v16, 0.0 }
 0x1ca   :  { %v409_v20 = vmax.f32 %v371_v18, 0.0  ;;  %v601_v21 = vpop.f32.mrb[2].mxu1 }
 0x1cb   :  { %v386_v22 = vadd.f32 %v601_v21, %v257_v13  ;;  %v380_v23 = vpop.f32.mrb[3].mxu1 }
 0x1cc   :  { %v648_v25 = vpack.c.bf16 %v410_v19, %v409_v20  ;;  %v381_v26 = vadd.f32 %v380_v23, %v252_v15 }
 0x1cd   :  { %v412_v28 = vmax.f32 %v386_v22, 0.0 }
 0x1ce   :  { %v411_v29 = vmax.f32 %v381_v26, 0.0  ;;  %v604_v30 = vpop.f32.mrb[4].mxu1  ;;  %649 = vmatpush3.bf16.msra.mxu0 %v648_v25 }
 0x1cf   :  { %v396_v31 = vadd.f32 %v604_v30, %v267_v24  ;;  %v390_v32 = vpop.f32.mrb[5].mxu1  ;;  %650 = vmatprep.subr.bf16.mxu0 %v691_v9 }
 0x1d0   :  { %v651_v33 = vpack.c.bf16 %v412_v28, %v411_v29  ;;  %v391_v34 = vadd.f32 %v390_v32, %v262_v27 }
 0x1d1   :  { %v414_v35 = vmax.f32 %v396_v31, 0.0 }
 0x1d2   :  { %v413_v37 = vmax.f32 %v391_v34, 0.0  ;;  %v607_v38 = vpop.f32.mrb[6].mxu1  ;;  %652 = vmatpush3.bf16.msra.mxu0 %v651_v33 }
 0x1d3   :  { %v406_v40 = vadd.f32 %v607_v38, %v277_v36  ;;  %v400_v41 = vpop.f32.mrb[7].mxu1  ;;  %653 = vmatprep.subr.bf16.mxu0 %v691_v9 }
 0x1d4   :  { %v654_v42 = vpack.c.bf16 %v414_v35, %v413_v37  ;;  %v401_v43 = vadd.f32 %v400_v41, %v272_v39 }
 0x1d5   :  { %v416_v44 = vmax.f32 %v406_v40, 0.0 }
 0x1d6   :  { %v415_v45 = vmax.f32 %v401_v43, 0.0  ;;  %655 = vmatpush3.bf16.msra.mxu0 %v654_v42 }
 0x1d7   :  { %656 = vmatprep.subr.bf16.mxu0 %v691_v9 }
 0x1d8   :  { %v657_v46 = vpack.c.bf16 %v416_v44, %v415_v45 }
 0x1da   :  { %658 = vmatpush3.bf16.msra.mxu0 %v657_v46 }
 0x1dd   :  { %625 = vmatmul.mubr.msk.f32.vlgmr.msra.gmra.mrb[8].mxu0 %vm279_vm1, %v417_v47 }
 0x2b0   :  { %v493_v49 = vpop.f32.mrb[8].mxu0 }
 0x2b1   :  { %v494_v50 = vadd.f32 %v493_v49, %v422_v48  ;;  %v626_v51 = vpop.f32.mrb[9].mxu0 }
 0x2b3   :  { %497 = vst [vmem:[#allocation2] sm:$0x7] %v494_v50 }
 0x2b4   :  { %677 = shalt.err (!%p674_p4)
}
 0x2b5   :  { %s678_s5 = scalar_lea.hbm %s879_s7, 64 }
 0x2b6   :  { %p679_p5 = scmp.ne.s32.totalorder %s879_s7, %s678_s5  ;;  %p682_p6 = scmp.lt.u32.totalorder %s678_s5, %s879_s7 }
 0x2b8   :  { %p684_p7 = pnand %p682_p6, %p679_p5 }
 0x2ba   :  { %687 = shalt.err (!%p684_p7)
}
 0x2bb   :  { %507 = dma.vmem_to_hbm [thread:$0]  %s505_s18, 64, %s879_s7, [#allocation3]  }
 0x2bc   :  { %688 = dma.done.wait [#allocation3], 64  }
 0x2bd   :  { %689 = vsyncadd [#allocation3], 4294967232 }
 0x2be   :  { %511 = vsyncpa [#allocation3], 1 }

</bundles_post_ra>
